<compile_context>
chip_gen: v7x
topology: tpu7x:2x2x1
jax: 0.10.0
libtpu: 0.0.40
codegen_flags: <defaults>
</compile_context>

<pallas_src>
import jax
import jax.numpy as jnp
from jax import lax
from jax.experimental import pallas as pl
from jax.experimental.pallas import tpu as pltpu

EPS = 1e-5  # nn.LayerNorm default

_MiB = 1024 * 1024
_MAX_BLOCK_BYTES = 4 * _MiB  # per-array block sweet spot (>=512 KiB ~ roofline)


def add_norm_kernel(x_ref, y_ref, gb_ref, o_ref):
    # Residual add + stats in f32 regardless of the I/O dtypes.
    z = x_ref[...].astype(jnp.float32) + y_ref[...].astype(jnp.float32)
    # Two-pass (centered) mean/variance: numerically safer than E[z^2]-mean^2.
    mean = jnp.mean(z, axis=-1, keepdims=True)
    centered = z - mean
    var = jnp.mean(centered * centered, axis=-1, keepdims=True)
    inv_std = lax.rsqrt(var + EPS)  # EUP slot — effectively free here
    gamma = gb_ref[0, :].astype(jnp.float32)
    beta = gb_ref[1, :].astype(jnp.float32)
    o_ref[...] = (centered * inv_std * gamma + beta).astype(o_ref.dtype)


def _sublane(dtype):
    # Rows per packed vreg sublane group: 8 (f32), 16 (bf16), 32 (i8/fp8).
    return max(8, 32 // jnp.dtype(dtype).itemsize)


def _vmem_capacity_bytes():
    try:
        info = pltpu.get_tpu_info()
        return int(getattr(info, "vmem_capacity_bytes", 128 * _MiB))
    except Exception:
        return 128 * _MiB


def _pick_row_tile(n_rows, d, x_dtype, y_dtype, out_dtype):
    """Row tile + vmem limit, generation-aware.

    Budget scales with physical VMEM: ~24 MiB / 48 MiB limit on v7x (64 MiB),
    ~48 MiB / 96 MiB on v5e/v6e (128 MiB)."""
    vmem_cap = _vmem_capacity_bytes()
    budget = min((vmem_cap * 3) // 8, 48 * _MiB)
    vmem_limit = min((vmem_cap * 3) // 4, 96 * _MiB)

    ix = jnp.dtype(x_dtype).itemsize
    iy = jnp.dtype(y_dtype).itemsize
    io = jnp.dtype(out_dtype).itemsize

    # Double-buffered streams (x, y, out) + f32 in-kernel intermediates
    # (z, centered), which are NOT double-buffered.
    bytes_per_row = 2 * (ix + iy + io) * d + 2 * 4 * d
    tile = budget // max(bytes_per_row, 1)

    # Cap per-array block bytes (replaces the old fixed 1024-row cap).
    max_item = max(ix, iy, io)
    tile = min(tile, _MAX_BLOCK_BYTES // max(d * max_item, 1))

    sub = max(_sublane(x_dtype), _sublane(y_dtype), _sublane(out_dtype))

    # Keep >= ~4 grid steps so the "parallel" axis can be split across the
    # two TensorCores on v7x (and the pipeline has something to overlap).
    steps_cap = -(-pl.cdiv(n_rows, 4) // sub) * sub  # ceil to sublane multiple
    tile = min(tile, steps_cap)

    tile = max(sub, (tile // sub) * sub)
    return tile, vmem_limit


def add_norm(xs, ys, gamma, beta):
    """xs, ys: (batch, seq, d_model); gamma, beta: (d_model,)."""
    assert xs.shape == ys.shape
    b, s, d = xs.shape
    n = b * s
    out_dtype = jnp.promote_types(xs.dtype, ys.dtype)

    # Row-major reshapes are free views; both inputs stream in native dtype.
    x2 = xs.reshape(n, d)
    y2 = ys.reshape(n, d)
    # Pack gamma/beta into one (2, d) array -> single small resident block.
    gb = jnp.stack([gamma, beta], axis=0)

    row_tile, vmem_limit = _pick_row_tile(n, d, xs.dtype, ys.dtype, out_dtype)

    # No padding: Pallas masks the partial boundary block's stores.
    grid = (pl.cdiv(n, row_tile),)

    ix = jnp.dtype(xs.dtype).itemsize
    iy = jnp.dtype(ys.dtype).itemsize
    io = jnp.dtype(out_dtype).itemsize
    cost = pl.CostEstimate(
        flops=int(7 * n * d),
        transcendentals=int(n),
        bytes_accessed=int(n * d * (ix + iy + io) + 2 * d * gb.dtype.itemsize),
    )

    # NOTE: block last dim == full d_model.  For production widths (multiples
    # of 128) this is lane-dense; for small d (demo d=32) stores are masked
    # but still correct.
    out = pl.pallas_call(
        add_norm_kernel,
        out_shape=jax.ShapeDtypeStruct((n, d), out_dtype),
        grid_spec=pltpu.PrefetchScalarGridSpec(
            num_scalar_prefetch=0,
            grid=grid,
            in_specs=[
                pl.BlockSpec((row_tile, d), lambda i: (i, 0)),  # xs rows
                pl.BlockSpec((row_tile, d), lambda i: (i, 0)),  # ys rows
                pl.BlockSpec((2, d), lambda i: (0, 0)),          # [gamma; beta]
            ],
            out_specs=pl.BlockSpec((row_tile, d), lambda i: (i, 0)),
        ),
        compiler_params=pltpu.CompilerParams(
            dimension_semantics=("parallel",),
            vmem_limit_bytes=vmem_limit,
        ),
        cost_estimate=cost,
    )(x2, y2, gb)

    return out.reshape(b, s, d)


if __name__ == "__main__":
    # Small shapes: batch=2, seq=8, d_model=32
    batch, seq, d_model = 2, 8, 32

    key = jax.random.PRNGKey(0)
    kx, ky = jax.random.split(key)
    xs = jax.random.normal(kx, (batch, seq, d_model), dtype=jnp.float32)
    ys = jax.random.normal(ky, (batch, seq, d_model), dtype=jnp.float32)

    # nn.LayerNorm deterministic init: weight = 1, bias = 0
    gamma = jnp.ones((d_model,), dtype=jnp.float32)
    beta = jnp.zeros((d_model,), dtype=jnp.float32)

    out = add_norm(xs, ys, gamma, beta)
    out = jax.block_until_ready(out)

    # Reference check in plain JAX (f32, matching the kernel's compute dtype)
    z = ys + xs
    mean = jnp.mean(z, axis=-1, keepdims=True)
    var = jnp.mean((z - mean) ** 2, axis=-1, keepdims=True)
    ref = (z - mean) / jnp.sqrt(var + EPS) * gamma + beta
    assert out.shape == (batch, seq, d_model)
    assert jnp.allclose(out, ref, atol=1e-5, rtol=1e-5), "mismatch vs reference"

    print("KERNEL_OK")
</pallas_src>

<mosaic_0001>
module attributes {stable_mosaic.version = 11 : i64} {
  func.func @add_norm_kernel(%arg0: i32, %arg1: memref<8x32xf32, #tpu.memory_space<vmem>>, %arg2: memref<8x32xf32, #tpu.memory_space<vmem>>, %arg3: memref<2x32xf32, #tpu.memory_space<vmem>>, %arg4: memref<8x32xf32, #tpu.memory_space<vmem>>) attributes {dimension_semantics = [#tpu.dimension_semantics<parallel>], iteration_bounds = array<i64: 2>, scalar_prefetch = 0 : i64, scratch_operands = 0 : i64, tpu.core_type = #tpu.core_type<tc>, window_params = [{transform_indices = @transform_0, window_bounds = array<i64: 8, 32>}, {transform_indices = @transform_1, window_bounds = array<i64: 8, 32>}, {pipeline_mode = #tpu.pipeline_mode<synchronous>, transform_indices = @transform_2, window_bounds = array<i64: 2, 32>}, {transform_indices = @transform_3, window_bounds = array<i64: 8, 32>}]} {
    %c0 = arith.constant 0 : index
    %c0_0 = arith.constant 0 : index
    %0 = vector.load %arg1[%c0, %c0_0] : memref<8x32xf32, #tpu.memory_space<vmem>>, vector<8x32xf32>
    %c0_1 = arith.constant 0 : index
    %c0_2 = arith.constant 0 : index
    %1 = vector.load %arg2[%c0_1, %c0_2] : memref<8x32xf32, #tpu.memory_space<vmem>>, vector<8x32xf32>
    %2 = arith.addf %0, %1 : vector<8x32xf32>
    %cst = arith.constant dense<0.000000e+00> : vector<8xf32>
    %3 = vector.multi_reduction <add>, %2, %cst [1] : vector<8x32xf32> to vector<8xf32>
    %4 = vector.shape_cast %3 : vector<8xf32> to vector<8x1xf32>
    %cst_3 = arith.constant 3.200000e+01 : f32
    %5 = vector.broadcast %cst_3 : f32 to vector<8x1xf32>
    %6 = arith.divf %4, %5 : vector<8x1xf32>
    %7 = vector.broadcast %6 : vector<8x1xf32> to vector<8x32xf32>
    %8 = arith.subf %2, %7 : vector<8x32xf32>
    %9 = arith.mulf %8, %8 : vector<8x32xf32>
    %cst_4 = arith.constant dense<0.000000e+00> : vector<8xf32>
    %10 = vector.multi_reduction <add>, %9, %cst_4 [1] : vector<8x32xf32> to vector<8xf32>
    %11 = vector.shape_cast %10 : vector<8xf32> to vector<8x1xf32>
    %cst_5 = arith.constant 3.200000e+01 : f32
    %12 = vector.broadcast %cst_5 : f32 to vector<8x1xf32>
    %13 = arith.divf %11, %12 : vector<8x1xf32>
    %cst_6 = arith.constant 9.99999974E-6 : f32
    %14 = vector.broadcast %cst_6 : f32 to vector<8x1xf32>
    %15 = arith.addf %13, %14 : vector<8x1xf32>
    %16 = math.rsqrt %15 : vector<8x1xf32>
    %c0_7 = arith.constant 0 : index
    %c0_8 = arith.constant 0 : index
    %17 = vector.load %arg3[%c0_7, %c0_8] : memref<2x32xf32, #tpu.memory_space<vmem>>, vector<1x32xf32>
    %18 = vector.shape_cast %17 : vector<1x32xf32> to vector<32xf32>
    %c1 = arith.constant 1 : index
    %c0_9 = arith.constant 0 : index
    %19 = vector.load %arg3[%c1, %c0_9] : memref<2x32xf32, #tpu.memory_space<vmem>>, vector<1x32xf32>
    %20 = vector.shape_cast %19 : vector<1x32xf32> to vector<32xf32>
    %21 = vector.broadcast %16 : vector<8x1xf32> to vector<8x32xf32>
    %22 = arith.mulf %8, %21 : vector<8x32xf32>
    %23 = vector.shape_cast %18 : vector<32xf32> to vector<1x32xf32>
    %24 = vector.broadcast %23 : vector<1x32xf32> to vector<8x32xf32>
    %25 = arith.mulf %22, %24 : vector<8x32xf32>
    %26 = vector.shape_cast %20 : vector<32xf32> to vector<1x32xf32>
    %27 = vector.broadcast %26 : vector<1x32xf32> to vector<8x32xf32>
    %28 = arith.addf %25, %27 : vector<8x32xf32>
    %c0_10 = arith.constant 0 : index
    %c0_11 = arith.constant 0 : index
    %29 = vector.load %arg4[%c0_10, %c0_11] : memref<8x32xf32, #tpu.memory_space<vmem>>, vector<8x32xf32>
    tpu.vector_store %arg4[%c0_10, %c0_11], %28 {strides = array<i32>} : memref<8x32xf32, #tpu.memory_space<vmem>>, vector<8x32xf32>,
    return
  }
  func.func @transform_0(%arg0: i32) -> (i32, i32) {
    %c0_i32 = arith.constant 0 : i32
    %c0_i32_0 = arith.constant 0 : i32
    return %arg0, %c0_i32 : i32, i32
  }
  func.func @transform_1(%arg0: i32) -> (i32, i32) {
    %c0_i32 = arith.constant 0 : i32
    %c0_i32_0 = arith.constant 0 : i32
    return %arg0, %c0_i32 : i32, i32
  }
  func.func @transform_2(%arg0: i32) -> (i32, i32) {
    %c0_i32 = arith.constant 0 : i32
    %c0_i32_0 = arith.constant 0 : i32
    %c0_i32_1 = arith.constant 0 : i32
    return %c0_i32, %c0_i32_0 : i32, i32
  }
  func.func @transform_3(%arg0: i32) -> (i32, i32) {
    %c0_i32 = arith.constant 0 : i32
    %c0_i32_0 = arith.constant 0 : i32
    return %arg0, %c0_i32 : i32, i32
  }
}

</mosaic_0001>

<bundles_post_ra>
// kernel: tpu_custom_call.1
= control target key start
LH: loop header
LB: loop body
LE: loop exit
PB: predicated region body
PF: predicated region fallthrough
CT: control target
= control target key end

     0   :  { %8 = vsyncpa [#allocation3], 0  ;;  %s896_s0 = inlined_call_operand.hbm [shape: f32[16,32], index: 0, kind: input, shape index: {}]   ;;  %s897_s1 = inlined_call_operand.hbm [shape: f32[16,32], index: 1, kind: input, shape index: {}]   ;;  %s898_s2 = inlined_call_operand.hbm [shape: f32[2,32], index: 2, kind: input, shape index: {}]   ;;  %s899_s3 = inlined_call_operand.hbm [shape: f32[16,32], index: 3, kind: output, shape index: {}]  }
   0x1   :  { %10 = vsyncpa [#allocation3 + $0x1], 0 }
   0x2   :  { %11 = vsyncpa [#allocation6], 0 }
   0x3   :  { %13 = vsyncpa [#allocation6 + $0x1], 0 }
   0x4   :  { %14 = vsyncpa [#allocation4], 0 }
   0x5   :  { %16 = vsyncpa [#allocation4 + $0x1], 0  ;;  %s653_s12 = smov 0   ;;  %s655_s13 = smov 0  }
   0x6   :  { %s657_s14 = smov 0   ;;  %s659_s15 = smov 0  }
   0x7 LB: > { %s674_s16 = sadd.s32 4294967295, %s627_s15   ;;  %s382_s17 = sadd.s32 4294967294, %s627_s15   ;;  %s627_s15 = sphi %s659_s15, %s925_s15   ;;  %s623_s14 = sphi %s657_s14, %s924_s14   ;;  %s619_s13 = sphi %s655_s13, %s923_s13   ;;  %s615_s12 = sphi %s653_s12, %s922_s12  }
   0x8   : > { %p42_p0 = scmp.ne.s32.totalorder %s619_s13, %s615_s12  ;;  %p900_p1 = scmp.eq.s32.totalorder %s674_s16, 0 }
   0x9   : > { %p119_p3 = scmp.eq.s32.totalorder %s382_s17, 1  ;;  %p383_p5 = scmp.ge.s32.totalorder %s627_s15, 1 }
   0xa   : > { %p683_p4 = por %p900_p1, %p42_p0  ;;  %p126_p7 = scmp.lt.s32.totalorder %s627_s15, 3 }
   0xb   : > { %p688_p6 = por %p119_p3, %p42_p0  ;;  %s629_s21 = smov [#allocation7]  }
   0xc   : > { %s904_s18 = scalar_select %p683_p4, 1, 0 }
   0xd   : > { %s905_s19 = scalar_select %p688_p6, 1, 0 }
   0xe   : > { %p693_p8 = pnand %p383_p5, %p126_p7  ;;  %s139_s22 = sshll.u32 %s629_s21, 4  ;;  %s140_s22 = int_to_ptr.vmem [resolvable:$true] %s139_s22 }
   0xf   : > { %s701_s23 = sadd.s32 1, %s627_s15   ;;  %s29_s27 = sadd.s32 1, %s623_s14 }
  0x10   : > { %s906_s20 = scalar_select %p693_p8, 1, 0 }
  0x11   : > { %p411_p10 = pneg %p693_p8  ;;  %s26_s25 = ssub.s32 %s627_s15, %s701_s23 }
  0x12   : > { %p711_p12 = scmp.eq.s32.totalorder %s26_s25, 0  ;;  %s465_s30 = scalar_lea.hbm %s898_s2, 32 }
  0x13   : > { %p705_p11 = pnand %p411_p10, %p900_p1  ;;  %p466_p0 = scmp.ne.s32.totalorder %s898_s2, %s465_s30 }
  0x14   : > { %s908_s26 = scalar_select %p711_p12, 1, 0 }
  0x15   : > { %p467_p3 = pneg %p705_p11  ;;  %p472_p10 = scmp.lt.u32.totalorder %s465_s30, %s898_s2 }
  0x17   : > { %p468_p5 = pnand %p467_p3, %p466_p0 }
  0x19   : > { %p469_p7 = pneg %p468_p5 }
  0x1b   : > { %p474_p9 = pnand %p472_p10, %p469_p7 }
  0x1d   : > { %477 = shalt.err (!%p474_p9)
}
  0x1e   : > { %s478_s8 = scalar_lea.vmem %s140_s22, 32  ;;  %p486_p6 = scmp.lt.s32.totalorder %s140_s22, %s140_s22 }
  0x1f   : > { %p479_p1 = scmp.ne.s32.totalorder %s140_s22, %s478_s8  ;;  %p487_p4 = scmp.lt.s32.totalorder %s478_s8, %s478_s8 }
  0x21   : > { %p481_p2 = pnand %p479_p1, %p467_p3  ;;  %p488_p8 = por %p487_p4, %p486_p6 }
  0x23   : > { %p482_p13 = pneg %p481_p2 }
  0x25   : > { %p489_p12 = pnand %p488_p8, %p482_p13 }
  0x27   : > { %492 = shalt.err (!%p489_p12)
}
  0x28   : > { %414 = dma.hbm_to_vmem [thread:$0]  (!%p705_p11), %s898_s2, 32, %s140_s22, [#allocation6]  }
  0x29   : > { %p909_p1 = scmp.ne.s32.totalorder %s908_s26, 0  ;;  %p37_p2 = scmp.eq.s32.totalorder %s627_s15, 0 }
  0x2a   : > { %p910_p4 = scmp.ne.s32.totalorder %s623_s14, %s619_s13  ;;  %p911_p6 = scmp.eq.s32.totalorder %s674_s16, 1 }
  0x2b   : > { %s737_s11 = scalar_select %p909_p1, %s623_s14, %s29_s27  }
  0x2c   : > { %p745_p8 = por %p911_p6, %p910_p4  ;;  %p427_p9 = scmp.lt.s32.totalorder %s627_s15, 2 }
  0x2d   : > { %s150_s21 = sand.u32 1, %s623_s14   ;;  %p913_p12 = pmov %p910_p4 }
  0x2e   : > { %s912_s17 = scalar_select %p745_p8, 1, 0 }
  0x2f   : > { %p38_p13 = por %p37_p2, %p913_p12  ;;  %s754_s24 = sshll.u32 %s150_s21, 3 }
  0x30   : > { %s387_s25 = sshll.u32 %s627_s15, 7  ;;  %s154_s27 = scalar_lea.vmem [#allocation2], %s754_s24 }
  0x31   : > { %s760_s26 = scalar_lea.hbm %s896_s0, %s387_s25  ;;  %s161_s29 = sshll.u32 %s154_s27, 4  ;;  %s767_s29 = int_to_ptr.vmem [resolvable:$true] %s161_s29 }
  0x32   : > { %p763_p11 = pnand %p427_p9, %p38_p13  ;;  %s772_s6 = scalar_lea.hbm %s897_s1, %s387_s25 }
  0x33   : > { %s151_s7 = scalar_lea.sflag [#allocation3], %s150_s21  ;;  %s493_s8 = scalar_lea.hbm %s760_s26, 128 }
  0x34   : > { %p494_p0 = scmp.ne.s32.totalorder %s760_s26, %s493_s8  ;;  %p495_p3 = pneg %p763_p11 }
  0x35   : > { %s498_s28 = scalar_lea.hbm %s896_s0, 256  ;;  %p499_p10 = scmp.lt.u32.totalorder %s760_s26, %s896_s0 }
  0x36   : > { %p496_p5 = pnand %p495_p3, %p494_p0  ;;  %p500_p1 = scmp.lt.u32.totalorder %s498_s28, %s493_s8 }
  0x37   : > { %p502_p4 = scmp.lt.u32.totalorder %s493_s8, %s760_s26 }
  0x38   : > { %p497_p7 = pneg %p496_p5  ;;  %p501_p2 = por %p500_p1, %p499_p10 }
  0x3a   : > { %p503_p6 = por %p502_p4, %p501_p2 }
  0x3c   : > { %p504_p9 = pnand %p503_p6, %p497_p7 }
  0x3e   : > { %507 = shalt.err (!%p504_p9)
}
  0x3f   : > { %s508_s21 = scalar_lea.vmem %s767_s29, 128  ;;  %s630_s25 = smov [#allocation2]  }
  0x40   : > { %p509_p12 = scmp.ne.s32.totalorder %s767_s29, %s508_s21  ;;  %s513_s4 = sshll.u32 %s630_s25, 4  ;;  %s514_s4 = int_to_ptr.vmem [resolvable:$false] %s513_s4 }
  0x41   : > { %s515_s5 = scalar_lea.vmem %s514_s4, 256  ;;  %p516_p5 = scmp.lt.s32.totalorder %s767_s29, %s514_s4 }
  0x42   : > { %p511_p13 = pnand %p509_p12, %p495_p3  ;;  %p517_p10 = scmp.lt.s32.totalorder %s515_s5, %s508_s21 }
  0x44   : > { %p512_p0 = pneg %p511_p13  ;;  %p518_p1 = por %p517_p10, %p516_p5 }
  0x46   : > { %p519_p2 = pnand %p518_p1, %p512_p0 }
  0x48   : > { %522 = shalt.err (!%p519_p2)
}
  0x49   : > { %418 = dma.hbm_to_vmem [thread:$0]  (!%p763_p11), %s760_s26, 128, %s767_s29, %s151_s7  }
  0x4a   : > { %s168_s8 = sand.u32 1, %s627_s15   ;;  %s172_s9 = scalar_lea.vmem [#allocation5], %s754_s24 }
  0x4b   : > { %s179_s10 = sshll.u32 %s172_s9, 4  ;;  %s169_s28 = scalar_lea.sflag [#allocation6], %s168_s8  ;;  %s180_s10 = int_to_ptr.vmem [resolvable:$true] %s179_s10 }
  0x4c   : > { %s523_s22 = scalar_lea.hbm %s772_s6, 128  ;;  %s528_s25 = scalar_lea.hbm %s897_s1, 256 }
  0x4d   : > { %p524_p7 = scmp.ne.s32.totalorder %s772_s6, %s523_s22  ;;  %p529_p9 = scmp.lt.u32.totalorder %s772_s6, %s897_s1 }
  0x4e   : > { %p530_p12 = scmp.lt.u32.totalorder %s528_s25, %s523_s22  ;;  %p532_p0 = scmp.lt.u32.totalorder %s523_s22, %s772_s6 }
  0x4f   : > { %p526_p4 = pnand %p524_p7, %p495_p3 }
  0x50   : > { %p531_p13 = por %p530_p12, %p529_p9 }
  0x51   : > { %p527_p6 = pneg %p526_p4 }
  0x52   : > { %p533_p5 = por %p532_p0, %p531_p13 }
  0x54   : > { %p534_p10 = pnand %p533_p5, %p527_p6 }
  0x56   : > { %537 = shalt.err (!%p534_p10)
}
  0x57   : > { %s538_s24 = scalar_lea.vmem %s180_s10, 128  ;;  %s631_s26 = smov [#allocation5]  }
  0x58   : > { %p539_p1 = scmp.ne.s32.totalorder %s180_s10, %s538_s24  ;;  %s543_s29 = sshll.u32 %s631_s26, 4  ;;  %s544_s29 = int_to_ptr.vmem [resolvable:$false] %s543_s29 }
  0x59   : > { %s545_s7 = scalar_lea.vmem %s544_s29, 256  ;;  %p546_p4 = scmp.lt.s32.totalorder %s180_s10, %s544_s29 }
  0x5a   : > { %p541_p2 = pnand %p539_p1, %p495_p3  ;;  %p547_p8 = scmp.lt.s32.totalorder %s545_s7, %s538_s24 }
  0x5c   : > { %p542_p7 = pneg %p541_p2  ;;  %p548_p9 = por %p547_p8, %p546_p4 }
  0x5e   : > { %p549_p12 = pnand %p548_p9, %p542_p7 }
  0x60   : > { %552 = shalt.err (!%p549_p12)
}
  0x61   : > { %421 = dma.hbm_to_vmem [thread:$0]  (!%p763_p11), %s772_s6, 128, %s180_s10, %s169_s28  }
  0x62   : > { %p915_p6 = scmp.ne.s32.totalorder %s906_s20, 0 }
  0x63   : > { %s823_s8 = sand.u32 (!%p915_p6), 1, %s619_s13   ;;  %p916_p8 = scmp.ne.s32.totalorder (!%p915_p6), %s904_s18, 0 }
  0x64   : > { %188 = sbr.rel (%p915_p6) target bundleno = 444 (0x1bc), region = 32  ;;  %s826_s9 = sshll.u32 (!%p915_p6), %s823_s8, 3 }
  0x65   : > { %s191_s22 = scalar_lea.sflag (!%p915_p6), [#allocation3], %s823_s8  ;;  %s194_s27 = scalar_lea.vmem (!%p915_p6), [#allocation2], %s826_s9 }
  0x6b   : > { %598 = dma.done.wait (%p916_p8), %s191_s22, 128  }
  0x6c   : > { %600 = vsyncadd (%p916_p8), %s191_s22, 4294967168  ;;  %s199_s20 = sand.u32 1, %s674_s16   ;;  %s203_s6 = scalar_lea.vmem [#allocation5], %s826_s9 }
  0x6d   : > { %s200_s30 = scalar_lea.sflag [#allocation6], %s199_s20 }
  0x6e   : > { %602 = dma.done.wait (%p916_p8), %s200_s30, 128  }
  0x6f   : > { %604 = vsyncadd (%p916_p8), %s200_s30, 4294967168  ;;  %p917_p11 = scmp.eq.s32.totalorder %s674_s16, 0 }
  0x71   : > { %606 = dma.done.wait (%p917_p11), [#allocation6], 32   ;;  %p918_p3 = pmov %p917_p11 }
  0x72   : > { %v235_v0 = vld [vmem:[%s194_s27] sm:$0xff]  ;;  %v236_v1 = vld [vmem:[%s203_s6] sm:$0xff]  ;;  %vm238_vm0 = vcmask 261120   ;;  %s398_s18 = sshll.u32 %s674_s16, 7  ;;  %s234_s10 = scalar_lea.vmem [#allocation8], %s826_s9 }
  0x73   : > { %608 = vsyncadd (%p918_p3), [#allocation6], 4294967264  ;;  %v237_v2 = vadd.f32 %v236_v1, %v235_v0  ;;  %v395_v13 = vld [vmem:[#allocation7] ss:$0 sm:$0xff]  ;;  %v396_v15 = vld [vmem:[#allocation7 + $0x1] ss:$0 sm:$0xff]  ;;  %s851_s4 = scalar_lea.hbm %s899_s3, %s398_s18 }
  0x74   : > { %s280_s28 = sshll.u32 %s234_s10, 4  ;;  %s267_s5 = scalar_lea.sflag [#allocation4], %s823_s8  ;;  %s853_s28 = int_to_ptr.vmem [resolvable:$true] %s280_s28 }
  0x75   : > { %v239_v3 = vsel %vm238_vm0, %v237_v2, 0.0  ;;  %s553_s24 = scalar_lea.vmem %s853_s28, 128  ;;  %p919_p0 = scmp.ne.s32.totalorder %s912_s17, 0 }
  0x76   : > { %240 = vadd.xlane.f32.xlu0 %v239_v3  ;;  %p554_p13 = scmp.ne.s32.totalorder %s853_s28, %s553_s24  ;;  %s632_s16 = smov [#allocation8]  }
  0x77   : > { %s557_s26 = sshll.u32 %s632_s16, 4  ;;  %s558_s26 = int_to_ptr.vmem [resolvable:$false] %s557_s26 }
  0x78   : > { %p555_p5 = pnand %p554_p13, %p919_p0  ;;  %s559_s29 = scalar_lea.vmem %s558_s26, 256 }
  0x79   : > { %p560_p1 = scmp.lt.s32.totalorder %s853_s28, %s558_s26  ;;  %p561_p2 = scmp.lt.s32.totalorder %s559_s29, %s553_s24 }
  0x7a   : > { %p556_p10 = pneg %p555_p5 }
  0x7b   : > { %p562_p7 = por %p561_p2, %p560_p1 }
  0x7d   : > { %p563_p4 = pnand %p562_p7, %p556_p10 }
 0x103   : > { %v241_v4 = vpop.xlane.xlu0 %240 }
 0x104   : > { %v243_v5 = vmul.f32 0.03125, %v241_v4 }
 0x106   : > { %v244_v6 = vsub.f32 %v237_v2, %v243_v5 }
 0x108   : > { %v245_v7 = vmul.f32 %v244_v6, %v244_v6 }
 0x10a   : > { %v246_v8 = vsel %vm238_vm0, %v245_v7, 0.0 }
 0x10b   : > { %247 = vadd.xlane.f32.xlu0 %v246_v8 }
 0x198   : > { %v248_v9 = vpop.xlane.xlu0 %247 }
 0x199   : > { %v249_v10 = vmul.f32 0.03125, %v248_v9 }
 0x19b   : > { %v250_v11 = vadd.f32 1e-05, %v249_v10 }
 0x19d   : > { %463 = vrsqrt.f32 %v250_v11 }
 0x1a7   : > { %v464_v12 = vpop.eup %463 }
 0x1a8   : > { %v254_v14 = vmul.f32 %v464_v12, %v244_v6 }
 0x1aa   : > { %v259_v16 = vmul.f32 %v395_v13, %v254_v14 }
 0x1ac   : > { %v264_v17 = vadd.f32 %v396_v15, %v259_v16 }
 0x1ae   : > { %265 = vst.msk [vmem:[%s234_s10] sm:$0xff] %vm238_vm0, %v264_v17 }
 0x1af   : > { %566 = shalt.err (!%p563_p4)
}
 0x1b0   : > { %s567_s7 = scalar_lea.hbm %s851_s4, 128  ;;  %s571_s22 = scalar_lea.hbm %s899_s3, 256 }
 0x1b1   : > { %p568_p9 = scmp.ne.s32.totalorder %s851_s4, %s567_s7  ;;  %p572_p8 = scmp.lt.u32.totalorder %s851_s4, %s899_s3 }
 0x1b2   : > { %p573_p11 = scmp.lt.u32.totalorder %s571_s22, %s567_s7  ;;  %p575_p13 = scmp.lt.u32.totalorder %s567_s7, %s851_s4 }
 0x1b3   : > { %p569_p12 = pnand %p568_p9, %p919_p0 }
 0x1b4   : > { %p574_p3 = por %p573_p11, %p572_p8 }
 0x1b5   : > { %p570_p6 = pneg %p569_p12 }
 0x1b6   : > { %p576_p5 = por %p575_p13, %p574_p3 }
 0x1b8   : > { %p577_p10 = pnand %p576_p5, %p570_p6 }
 0x1ba   : > { %580 = shalt.err (!%p577_p10)
}
 0x1bb   : > { %409 = dma.vmem_to_hbm [thread:$0]  (%p919_p0), %s853_s28, 128, %s851_s4, %s267_s5  }
 0x1bc PF: > { %s292_s30 = sand.u32 1, %s615_s12   ;;  %p920_p1 = scmp.ne.s32.totalorder %s905_s19, 0 }
 0x1bd   : > { %p921_p2 = scmp.ge.s32.totalorder %s627_s15, 2  ;;  %s293_s6 = scalar_lea.sflag [#allocation4], %s292_s30 }
 0x1bf   : > { %p423_p7 = pnand %p921_p2, %p920_p1 }
 0x1c1   : > { %610 = dma.done.wait (!%p423_p7), %s293_s6, 128  }
 0x1c2   : > { %612 = vsyncadd (!%p423_p7), %s293_s6, 4294967168  ;;  %p19_p4 = scmp.ge.s32.totalorder %s701_s23, 4   ;;  %s922_s12 = smov %s619_s13 }
 0x1c3   : > { %s923_s13 = smov %s623_s14  ;;  %s924_s14 = smov %s737_s11 }
 0x1c4   : > { %s925_s15 = smov %s701_s23  ;;  %21 = sbr.rel (!%p19_p4) target bundleno = 7 (0x7), region = 94 }
 0x1cb   :  { %298 = vsyncpa [#allocation3], 1 }
 0x1cc   :  { %300 = vsyncpa [#allocation3 + $0x1], 1 }
 0x1cd   :  { %301 = vsyncpa [#allocation6], 1 }
 0x1ce   :  { %303 = vsyncpa [#allocation6 + $0x1], 1 }
 0x1cf   :  { %304 = vsyncpa [#allocation4], 1 }
 0x1d0   :  { %306 = vsyncpa [#allocation4 + $0x1], 1 }

</bundles_post_ra>
